<compile_context>
chip_gen: v6e
topology: v6e:2x2x1
jax: 0.10.0
libtpu: 0.0.40
codegen_flags: <defaults>
</compile_context>

<pallas_src>
import math
import jax
import jax.numpy as jnp
from jax.experimental import pallas as pl
from jax.experimental.pallas import tpu as pltpu

LANE = 128      # vreg lane width (last dim)
SUBLANE = 8     # vreg sublane count (second-to-last dim, fp32)


def _round_up(v, m):
    return ((v + m - 1) // m) * m


def _mlp_kernel(x_ref, w_ref, beff_ref, b2_ref, o_ref):
    """One row tile: y = relu(x @ W_eff + b_eff) + b2 (fp32 MXU accumulation)."""
    x = x_ref[...].astype(w_ref.dtype)   # no-op if wrapper already cast/padded
    y = jnp.dot(x, w_ref[...], preferred_element_type=jnp.float32)
    y = jnp.maximum(y + beff_ref[...], 0.0) + b2_ref[...]   # relu BEFORE bias2
    o_ref[...] = y.astype(o_ref.dtype)


def graph_feature_map_mlp(x, w1, b1, w2, b2, *, tm=1024,
                          compute_dtype=jnp.bfloat16,
                          vmem_budget_bytes=None):
    """Fused GCN feature-map MLP on TPU via Pallas.

    x  : [N, in_features] (float32)
    w1 : [in_features, hid],  b1 : [hid]
    w2 : [hid, out],          b2 : [out]
    returns [N, out] in x.dtype
    """
    N, F_in = x.shape
    F_in_w, hid = w1.shape
    hid_w, F_out = w2.shape
    assert F_in == F_in_w and hid == hid_w
    out_dtype = x.dtype

    # ---- collapse the two linear layers (weights are static; under jit this
    # folds/hoists; even eagerly it is O(F_in*hid*F_out), negligible vs N) ----
    w_eff = jnp.dot(w1.astype(jnp.float32), w2.astype(jnp.float32))   # [F_in, F_out]
    b_eff = jnp.dot(b1.astype(jnp.float32), w2.astype(jnp.float32))   # [F_out]

    # Lane-dense feature padding (unmasked vld/vst).
    F_in_p = _round_up(F_in, LANE)
    F_out_p = _round_up(F_out, LANE)

    # ---- per-generation VMEM budget ----
    if vmem_budget_bytes is None:
        try:
            cap = int(pltpu.get_tpu_info().vmem_capacity_bytes)
        except Exception:
            cap = 64 * 1024 * 1024   # v7x per-TC size == smallest across gens
        vmem_budget_bytes = int(cap * 0.7)   # headroom for compiler scratch
    vmem_budget_bytes = int(vmem_budget_bytes)

    c_sz = jnp.dtype(compute_dtype).itemsize
    o_sz = jnp.dtype(out_dtype).itemsize
    # x tile element size: fp32 if we pass x through uncast, compute dtype if
    # the wrapper has to pad+cast it. Use the larger (conservative).
    x_sz = max(jnp.dtype(x.dtype).itemsize, c_sz)

    def est_bytes(tm_):
        return (2 * tm_ * F_in_p * x_sz          # x row tile (double-buffered)
                + 2 * F_in_p * F_out_p * c_sz    # W_eff (resident; 2x is conservative)
                + 4 * F_out_p * 4                # b_eff + b2 (fp32)
                + 2 * tm_ * F_out_p * o_sz       # output tile (double-buffered)
                + tm_ * F_out_p * 4)             # fp32 epilogue intermediate

    # Row tile: largest multiple of 8 that fits the budget (no ">=2 steps" cap).
    N8 = _round_up(N, SUBLANE)
    tm = min(_round_up(max(tm, SUBLANE), SUBLANE), N8)
    while est_bytes(tm) > vmem_budget_bytes and tm > SUBLANE:
        tm = max(SUBLANE, _round_up(tm // 2, SUBLANE))
    if est_bytes(tm) > vmem_budget_bytes:
        # TODO(synk): chunk F_out for enormous feature maps instead of erroring.
        raise ValueError(
            f"W_eff [{F_in_p}x{F_out_p}] + minimum row tile exceed the VMEM "
            f"budget ({vmem_budget_bytes} bytes); reduce feature sizes.")

    # Divisor-style row tiling over round_up(N, 8): at most 7 padded rows per
    # grid step instead of up to tm-8 total.
    n_rows = pl.cdiv(N8, tm)
    tm = _round_up(pl.cdiv(N8, n_rows), SUBLANE)
    N_p = tm * n_rows

    # ---- operand preparation (skip the extra HBM pass over x when possible) --
    if (N_p != N) or (F_in_p != F_in):
        x_in = jnp.pad(x, ((0, N_p - N), (0, F_in_p - F_in))).astype(compute_dtype)
    else:
        x_in = x   # cast fp32 -> compute_dtype inside the kernel (VPU, free slot)

    w_eff_p = w_eff
    if (F_in_p != F_in) or (F_out_p != F_out):
        w_eff_p = jnp.pad(w_eff, ((0, F_in_p - F_in), (0, F_out_p - F_out)))
    w_eff_p = w_eff_p.astype(compute_dtype)
    b_eff_p = jnp.pad(b_eff, (0, F_out_p - F_out)).reshape(1, F_out_p)              # fp32
    b2_p = jnp.pad(b2.astype(jnp.float32), (0, F_out_p - F_out)).reshape(1, F_out_p)

    cost = pl.CostEstimate(
        flops=int(2 * N * F_in * F_out),   # useful work of the collapsed matmul
        transcendentals=0,
        bytes_accessed=int(x_in.size * jnp.dtype(x_in.dtype).itemsize
                           + w_eff_p.size * c_sz          # read once (resident)
                           + b_eff_p.size * 4 + b2_p.size * 4
                           + N_p * F_out_p * o_sz),
    )

    out_p = pl.pallas_call(
        _mlp_kernel,
        out_shape=jax.ShapeDtypeStruct((N_p, F_out_p), out_dtype),
        grid_spec=pltpu.PrefetchScalarGridSpec(
            num_scalar_prefetch=0,
            grid=(n_rows,),
            in_specs=[
                pl.BlockSpec((tm, F_in_p), lambda i: (i, 0)),       # x row tile
                pl.BlockSpec((F_in_p, F_out_p), lambda i: (0, 0)),  # W_eff (resident)
                pl.BlockSpec((1, F_out_p), lambda i: (0, 0)),       # b_eff (fp32)
                pl.BlockSpec((1, F_out_p), lambda i: (0, 0)),       # b2   (fp32)
            ],
            out_specs=pl.BlockSpec((tm, F_out_p), lambda i: (i, 0)),
        ),
        compiler_params=pltpu.CompilerParams(
            dimension_semantics=("parallel",),
            vmem_limit_bytes=vmem_budget_bytes),
        cost_estimate=cost,
    )(x_in, w_eff_p, b_eff_p, b2_p)

    # TODO(synk): optional fp8 quantization of W_eff on v7x if MXU-bound (not drop-in).
    # TODO(synk): explicit core_map split of the row axis for small-N v7x dual-TC use.
    return out_p[:N, :F_out]


def _reference(x, w1, b1, w2, b2):
    h = x @ w1 + b1
    return jnp.maximum(h @ w2, 0.0) + b2


if __name__ == "__main__":
    key = jax.random.PRNGKey(0)

    # --- Test 1: small shapes consistent with the module -------------------
    N, F_in, hid, F_out = 16, 8, 32, 8
    kx, kw1, kb1, kw2, kb2 = jax.random.split(key, 5)

    # Init mirroring reset_parameters (uniform +/- 1/sqrt(fan)).
    stdv1 = 1.0 / math.sqrt(hid)
    stdv2 = 1.0 / math.sqrt(F_out)
    w1 = jax.random.uniform(kw1, (F_in, hid), jnp.float32, -stdv1, stdv1)
    b1 = jax.random.uniform(kb1, (hid,), jnp.float32, -stdv2, stdv2)
    w2 = jax.random.uniform(kw2, (hid, F_out), jnp.float32, -stdv2, stdv2)
    b2 = jax.random.uniform(kb2, (F_out,), jnp.float32, -stdv2, stdv2)
    x = jax.random.normal(kx, (N, F_in), jnp.float32)
    ref = _reference(x, w1, b1, w2, b2)

    out_f32 = jax.block_until_ready(
        graph_feature_map_mlp(x, w1, b1, w2, b2, compute_dtype=jnp.float32))
    assert out_f32.shape == (N, F_out)
    assert jnp.allclose(out_f32, ref, atol=1e-4, rtol=1e-4), "fp32 mismatch (test 1)"

    out_bf16 = jax.block_until_ready(graph_feature_map_mlp(x, w1, b1, w2, b2))
    assert out_bf16.shape == (N, F_out)
    assert jnp.allclose(out_bf16, ref, atol=3e-2, rtol=3e-2), "bf16 mismatch (test 1)"

    # --- Test 2: ragged N + non-128 features to exercise padding/tiling ----
    key2 = jax.random.PRNGKey(1)
    N2, F_in2, hid2, F_out2 = 300, 96, 256, 160
    kx, kw1, kb1, kw2, kb2 = jax.random.split(key2, 5)
    s1 = 1.0 / math.sqrt(hid2)
    s2 = 1.0 / math.sqrt(F_out2)
    w1b = jax.random.uniform(kw1, (F_in2, hid2), jnp.float32, -s1, s1)
    b1b = jax.random.uniform(kb1, (hid2,), jnp.float32, -s2, s2)
    w2b = jax.random.uniform(kw2, (hid2, F_out2), jnp.float32, -s2, s2)
    b2b = jax.random.uniform(kb2, (F_out2,), jnp.float32, -s2, s2)
    xb = jax.random.normal(kx, (N2, F_in2), jnp.float32)
    refb = _reference(xb, w1b, b1b, w2b, b2b)

    outb = jax.block_until_ready(
        graph_feature_map_mlp(xb, w1b, b1b, w2b, b2b,
                              tm=128, compute_dtype=jnp.float32))
    assert outb.shape == (N2, F_out2)
    assert jnp.allclose(outb, refb, atol=1e-4, rtol=1e-4), "fp32 mismatch (test 2)"

    print("KERNEL_OK")
</pallas_src>

<mosaic_0001>
module attributes {stable_mosaic.version = 11 : i64} {
  func.func @_mlp_kernel(%arg0: i32, %arg1: memref<16x128xf32, #tpu.memory_space<vmem>>, %arg2: memref<128x128xf32, #tpu.memory_space<vmem>>, %arg3: memref<1x128xf32, #tpu.memory_space<vmem>>, %arg4: memref<1x128xf32, #tpu.memory_space<vmem>>, %arg5: memref<16x128xf32, #tpu.memory_space<vmem>>) attributes {dimension_semantics = [#tpu.dimension_semantics<parallel>], iteration_bounds = array<i64: 1>, scalar_prefetch = 0 : i64, scratch_operands = 0 : i64, tpu.core_type = #tpu.core_type<tc>, window_params = [{transform_indices = @transform_0, window_bounds = array<i64: 16, 128>}, {pipeline_mode = #tpu.pipeline_mode<synchronous>, transform_indices = @transform_1, window_bounds = array<i64: 128, 128>}, {pipeline_mode = #tpu.pipeline_mode<synchronous>, transform_indices = @transform_2, window_bounds = array<i64: 1, 128>}, {pipeline_mode = #tpu.pipeline_mode<synchronous>, transform_indices = @transform_3, window_bounds = array<i64: 1, 128>}, {transform_indices = @transform_4, window_bounds = array<i64: 16, 128>}]} {
    %c0 = arith.constant 0 : index
    %c0_0 = arith.constant 0 : index
    %0 = vector.load %arg1[%c0, %c0_0] : memref<16x128xf32, #tpu.memory_space<vmem>>, vector<16x128xf32>
    %c0_1 = arith.constant 0 : index
    %c0_2 = arith.constant 0 : index
    %1 = vector.load %arg2[%c0_1, %c0_2] : memref<128x128xf32, #tpu.memory_space<vmem>>, vector<128x128xf32>
    %cst = arith.constant dense<0.000000e+00> : vector<16x128xf32>
    %2 = tpu.matmul %0, %1, %cst {dimension_numbers = #tpu.dot_dimension_numbers<[1], [0], [0], [1], [0, 0, 1, 1], [], []>} : vector<16x128xf32>, vector<128x128xf32>, vector<16x128xf32> -> vector<16x128xf32>
    %c0_3 = arith.constant 0 : index
    %c0_4 = arith.constant 0 : index
    %3 = vector.load %arg3[%c0_3, %c0_4] : memref<1x128xf32, #tpu.memory_space<vmem>>, vector<1x128xf32>
    %4 = vector.broadcast %3 : vector<1x128xf32> to vector<16x128xf32>
    %5 = arith.addf %2, %4 : vector<16x128xf32>
    %cst_5 = arith.constant 0.000000e+00 : f32
    %6 = vector.broadcast %cst_5 : f32 to vector<16x128xf32>
    %7 = arith.maximumf %5, %6 : vector<16x128xf32>
    %c0_6 = arith.constant 0 : index
    %c0_7 = arith.constant 0 : index
    %8 = vector.load %arg4[%c0_6, %c0_7] : memref<1x128xf32, #tpu.memory_space<vmem>>, vector<1x128xf32>
    %9 = vector.broadcast %8 : vector<1x128xf32> to vector<16x128xf32>
    %10 = arith.addf %7, %9 : vector<16x128xf32>
    %c0_8 = arith.constant 0 : index
    %c0_9 = arith.constant 0 : index
    %11 = vector.load %arg5[%c0_8, %c0_9] : memref<16x128xf32, #tpu.memory_space<vmem>>, vector<16x128xf32>
    tpu.vector_store %arg5[%c0_8, %c0_9], %10 {strides = array<i32>} : memref<16x128xf32, #tpu.memory_space<vmem>>, vector<16x128xf32>,
    return
  }
  func.func @transform_0(%arg0: i32) -> (i32, i32) {
    %c0_i32 = arith.constant 0 : i32
    %c0_i32_0 = arith.constant 0 : i32
    return %arg0, %c0_i32 : i32, i32
  }
  func.func @transform_1(%arg0: i32) -> (i32, i32) {
    %c0_i32 = arith.constant 0 : i32
    %c0_i32_0 = arith.constant 0 : i32
    %c0_i32_1 = arith.constant 0 : i32
    return %c0_i32, %c0_i32_0 : i32, i32
  }
  func.func @transform_2(%arg0: i32) -> (i32, i32) {
    %c0_i32 = arith.constant 0 : i32
    %c0_i32_0 = arith.constant 0 : i32
    %c0_i32_1 = arith.constant 0 : i32
    return %c0_i32, %c0_i32_0 : i32, i32
  }
  func.func @transform_3(%arg0: i32) -> (i32, i32) {
    %c0_i32 = arith.constant 0 : i32
    %c0_i32_0 = arith.constant 0 : i32
    %c0_i32_1 = arith.constant 0 : i32
    return %c0_i32, %c0_i32_0 : i32, i32
  }
  func.func @transform_4(%arg0: i32) -> (i32, i32) {
    %c0_i32 = arith.constant 0 : i32
    %c0_i32_0 = arith.constant 0 : i32
    return %arg0, %c0_i32 : i32, i32
  }
}

</mosaic_0001>

<bundles_post_ra>
// kernel: tpu_custom_call.1
= control target key start
LH: loop header
LB: loop body
LE: loop exit
PB: predicated region body
PF: predicated region fallthrough
CT: control target
= control target key end

     0   :  { %9 = vsyncpa [#allocation3], 0  ;;  %s357_s0 = inlined_call_operand.hbm [shape: f32[16,128], index: 0, kind: input, shape index: {}]   ;;  %s358_s1 = inlined_call_operand.hbm [shape: f32[128,128], index: 1, kind: input, shape index: {}]   ;;  %s359_s2 = inlined_call_operand.vmem [shape: f32[1,128], index: 2, kind: input, shape index: {}]   ;;  %s360_s3 = inlined_call_operand.vmem [shape: f32[1,128], index: 3, kind: input, shape index: {}]   ;;  %s361_s4 = inlined_call_operand.hbm [shape: f32[16,128], index: 4, kind: output, shape index: {}]  }
   0x1   :  { %10 = vsyncpa [#allocation6], 0 }
   0x2   :  { %11 = vsyncpa [#allocation4], 0  ;;  %s303_s15 = smov [#allocation2]  }
   0x3   :  { %s17_s16 = sshll.u32 %s303_s15, 4  ;;  %s18_s16 = int_to_ptr.vmem [resolvable:$true] %s17_s16 }
   0x4   :  { %s245_s17 = scalar_lea.vmem %s18_s16, 256  ;;  %p250_p1 = scmp.lt.s32.totalorder %s18_s16, %s18_s16 }
   0x5   :  { %p246_p0 = scmp.ne.s32.totalorder %s18_s16, %s245_s17  ;;  %p251_p2 = scmp.lt.s32.totalorder %s245_s17, %s245_s17 }
   0x7   :  { %p252_p3 = por %p251_p2, %p250_p1 }
   0x9   :  { %p253_p4 = pnand %p252_p3, %p246_p0 }
   0xb   :  { %256 = shalt.err (!%p253_p4)
}
   0xc   :  { %s304_s18 = smov 128   ;;  %s305_s19 = smov 8  }
   0xd   :  { %23 = dma.hbm_to_vmem [thread:$0]  %s357_s0, 256, %s18_s16, [#allocation3], %s304_s18, %s304_s18, %s305_s19  }
   0xe   :  { %s306_s22 = smov [#allocation5]  }
   0xf   :  { %s29_s23 = sshll.u32 %s306_s22, 4  ;;  %s30_s23 = int_to_ptr.vmem [resolvable:$true] %s29_s23 }
  0x10   :  { %s265_s24 = scalar_lea.vmem %s30_s23, 2048  ;;  %p270_p6 = scmp.lt.s32.totalorder %s30_s23, %s30_s23 }
  0x11   :  { %p266_p5 = scmp.ne.s32.totalorder %s30_s23, %s265_s24  ;;  %p271_p7 = scmp.lt.s32.totalorder %s265_s24, %s265_s24 }
  0x13   :  { %p272_p8 = por %p271_p7, %p270_p6 }
  0x15   :  { %p273_p9 = pnand %p272_p8, %p266_p5 }
  0x17   :  { %276 = shalt.err (!%p273_p9)
}
  0x18   :  { %35 = dma.hbm_to_vmem [thread:$0]  %s358_s1, 2048, %s30_s23, [#allocation6], %s304_s18, %s304_s18, %s305_s19  }
  0x19   :  { %297 = dma.done.wait [#allocation3], 256  }
  0x1a   :  { %298 = vsyncadd [#allocation3], 4294967040 }
  0x1b   :  { %299 = dma.done.wait [#allocation6], 2048  }
  0x1c   :  { %300 = vsyncadd [#allocation6], 4294965248  ;;  %v63_v0 = vld [vmem:[#allocation5 + $0x78] sm:$0xff]  ;;  %v62_v1 = vld [vmem:[#allocation5 + $0x70] sm:$0xff]  ;;  %s307_s29 = smov [#allocation7]  }
  0x1d   :  { %197 = vmatprep.subr.mxu0 %v63_v0  ;;  %v61_v2 = vld [vmem:[#allocation5 + $0x68] sm:$0xff]  ;;  %v60_v3 = vld [vmem:[#allocation5 + $0x60] sm:$0xff]  ;;  %v46_v4 = vld [vmem:[#allocation2] sm:$0xff]  ;;  %s164_s30 = sshll.u32 %s307_s29, 4  ;;  %s165_s30 = int_to_ptr.vmem [resolvable:$true] %s164_s30 }
  0x1e   :  { %198 = vmatpush3.msra.mxu0 %v63_v0  ;;  %v59_v5 = vld [vmem:[#allocation5 + $0x58] sm:$0xff]  ;;  %229 = vmatprep.mubr.f32.mxu0 %v46_v4  ;;  %v58_v6 = vld [vmem:[#allocation5 + $0x50] sm:$0xff]  ;;  %v57_v7 = vld [vmem:[#allocation5 + $0x48] sm:$0xff]  ;;  %s277_s5 = scalar_lea.vmem %s165_s30, 256  ;;  %p282_p11 = scmp.lt.s32.totalorder %s165_s30, %s165_s30 }
  0x1f   :  { %199 = vmatprep.subr.mxu0 %v62_v1  ;;  %v56_v8 = vld [vmem:[#allocation5 + $0x40] sm:$0xff]  ;;  %v55_v9 = vld [vmem:[#allocation5 + $0x38] sm:$0xff]  ;;  %v54_v10 = vld [vmem:[#allocation5 + $0x30] sm:$0xff]  ;;  %p278_p10 = scmp.ne.s32.totalorder %s165_s30, %s277_s5  ;;  %p283_p12 = scmp.lt.s32.totalorder %s277_s5, %s277_s5 }
  0x20   :  { %200 = vmatpush3.msra.mxu0 %v62_v1  ;;  %v53_v11 = vld [vmem:[#allocation5 + $0x28] sm:$0xff]  ;;  %v52_v12 = vld [vmem:[#allocation5 + $0x20] sm:$0xff]  ;;  %v51_v13 = vld [vmem:[#allocation5 + $0x18] sm:$0xff] }
  0x21   :  { %201 = vmatprep.subr.mxu0 %v61_v2  ;;  %v50_v14 = vld [vmem:[#allocation5 + $0x10] sm:$0xff]  ;;  %v49_v15 = vld [vmem:[#allocation5 + $0x8] sm:$0xff]  ;;  %v48_v16 = vld [vmem:[#allocation5] sm:$0xff]  ;;  %p284_p13 = por %p283_p12, %p282_p11 }
  0x22   :  { %202 = vmatpush3.msra.mxu0 %v61_v2  ;;  %v47_v17 = vld [vmem:[#allocation2 + $0x8] sm:$0xff]  ;;  %v177_v18 = vld [vmem:[%s359_s2] ss:$0 sm:$0xff] }
  0x23   :  { %203 = vmatprep.subr.mxu0 %v60_v3  ;;  %v178_v21 = vld [vmem:[%s360_s3] ss:$0 sm:$0xff]  ;;  %p285_p0 = pnand %p284_p13, %p278_p10 }
  0x24   :  { %204 = vmatpush3.msra.mxu0 %v60_v3 }
  0x25   :  { %205 = vmatprep.subr.mxu0 %v59_v5 }
  0x26   :  { %206 = vmatpush3.msra.mxu0 %v59_v5 }
  0x27   :  { %207 = vmatprep.subr.mxu0 %v58_v6 }
  0x28   :  { %208 = vmatpush3.msra.mxu0 %v58_v6 }
  0x29   :  { %209 = vmatprep.subr.mxu0 %v57_v7 }
  0x2a   :  { %210 = vmatpush3.msra.mxu0 %v57_v7 }
  0x2b   :  { %211 = vmatprep.subr.mxu0 %v56_v8 }
  0x2c   :  { %212 = vmatpush3.msra.mxu0 %v56_v8 }
  0x2d   :  { %213 = vmatprep.subr.mxu0 %v55_v9 }
  0x2e   :  { %214 = vmatpush3.msra.mxu0 %v55_v9 }
  0x2f   :  { %215 = vmatprep.subr.mxu0 %v54_v10 }
  0x30   :  { %216 = vmatpush3.msra.mxu0 %v54_v10 }
  0x31   :  { %217 = vmatprep.subr.mxu0 %v53_v11 }
  0x32   :  { %218 = vmatpush3.msra.mxu0 %v53_v11 }
  0x33   :  { %219 = vmatprep.subr.mxu0 %v52_v12 }
  0x34   :  { %220 = vmatpush3.msra.mxu0 %v52_v12 }
  0x35   :  { %221 = vmatprep.subr.mxu0 %v51_v13 }
  0x36   :  { %222 = vmatpush3.msra.mxu0 %v51_v13 }
  0x37   :  { %223 = vmatprep.subr.mxu0 %v50_v14 }
  0x38   :  { %224 = vmatpush3.msra.mxu0 %v50_v14 }
  0x39   :  { %225 = vmatprep.subr.mxu0 %v49_v15 }
  0x3a   :  { %226 = vmatpush3.msra.mxu0 %v49_v15 }
  0x3b   :  { %227 = vmatprep.subr.mxu0 %v48_v16 }
  0x3c   :  { %228 = vmatpush3.msra.mxu0 %v48_v16 }
  0x3d   :  { %230 = vmatmul.mubr.f32.vlgmr.msra.gmra.mxu0 %v47_v17 }
  0xfd   :  { %v231_v19 = vpop.f32.mrf.mxu0 }
  0xfe   :  { %v143_v20 = vadd.f32 %v231_v19, %v177_v18 }
  0xff   :  { %v137_v22 = vpop.f32.mrf.mxu0 }
 0x100   :  { %v147_v23 = vmax.f32 %v143_v20, 0.0  ;;  %v138_v24 = vadd.f32 %v177_v18, %v137_v22 }
 0x102   :  { %v156_v25 = vadd.f32 %v178_v21, %v147_v23  ;;  %v146_v26 = vmax.f32 %v138_v24, 0.0 }
 0x104   :  { %158 = vst [vmem:[#allocation7 + $0x8] sm:$0xff] %v156_v25  ;;  %v155_v27 = vadd.f32 %v178_v21, %v146_v26 }
 0x106   :  { %157 = vst [vmem:[#allocation7] sm:$0xff] %v155_v27 }
 0x107   :  { %288 = shalt.err (!%p285_p0)
}
 0x108   :  { %170 = dma.vmem_to_hbm [thread:$0]  %s165_s30, 256, %s361_s4, [#allocation4], %s304_s18, %s304_s18, %s305_s19  }
 0x109   :  { %301 = dma.done.wait [#allocation4], 256  }
 0x10a   :  { %302 = vsyncadd [#allocation4], 4294967040 }
 0x10b   :  { %174 = vsyncpa [#allocation3], 1 }
 0x10c   :  { %175 = vsyncpa [#allocation6], 1 }
 0x10d   :  { %176 = vsyncpa [#allocation4], 1 }

</bundles_post_ra>
